<compile_context>
chip_gen: v5e
topology: v5e:2x2
jax: 0.10.0
libtpu: 0.0.40
codegen_flags: <defaults>
</compile_context>

<pallas_src>
from functools import partial

import jax
import jax.numpy as jnp
from jax.experimental import pallas as pl
from jax.experimental.pallas import tpu as pltpu


def _round_up(x, m):
    return (x + m - 1) // m * m


# ---------------------------------------------------------------------------------
# Activations (pure jnp; used both inside the Pallas kernel and in the XLA reference)
# ---------------------------------------------------------------------------------
def _apply_activation(y, act):
    if act == 'relu':
        return jnp.maximum(y, 0.0)
    if act == 'lrelu':
        return jnp.where(y > 0, y, 0.2 * y)
    if act == 'prelu':
        # nn.PReLU() single shared slope, init value 0.25
        return jnp.where(y > 0, y, 0.25 * y)
    if act == 'selu':
        alpha = 1.6732632423543772
        scale = 1.0507009873554805
        return scale * jnp.where(y > 0, y, alpha * (jnp.exp(y) - 1.0))
    if act == 'tanh':
        return jnp.tanh(y)
    return y


# ---------------------------------------------------------------------------------
# Fused Pallas kernel, grid = (G, Cn, Kt):
#   G  : stat groups (samples; 1 for 'batch' norm)             -> "parallel"
#   Cn : channel tiles (1 for 'ln')                            -> "parallel"
#   Kt : im2col reduction tiles                                 -> "arbitrary"
# Refs:
#   a_ref    : [1, Ms, tk]  bf16   im2col rows (zero-padded to x16 rows)
#   w_ref    : [tk, tc]     bf16   pre-packed weight tile
#   bias_ref : [1, 1, tc]   f32
#   s_ref    : [1, 1, tc]   f32    norm scale (gamma / AdaIN weight / ones)
#   t_ref    : [1, 1, tc]   f32    norm shift (beta  / AdaIN bias   / zeros)
#   o_ref    : [1, Ms, tc]  f32
#   acc_ref  : [Ms, tc]     f32    VMEM accumulator (persists across the K axis)
# ---------------------------------------------------------------------------------
def _conv_block_kernel(a_ref, w_ref, bias_ref, s_ref, t_ref, o_ref, acc_ref, *,
                       norm, act, eps, rows_valid, cout_valid):
    k = pl.program_id(2)

    @pl.when(k == 0)
    def _init():
        acc_ref[...] = jnp.zeros_like(acc_ref)

    acc_ref[...] += jnp.dot(a_ref[0], w_ref[...],
                            preferred_element_type=jnp.float32)   # MXU, f32 acc

    @pl.when(k == pl.num_programs(2) - 1)
    def _finalize():
        y = acc_ref[...] + bias_ref[0]                      # [Ms, tc] f32
        ms, _ = y.shape

        if norm != 'none':
            # Row (axis-0) reductions on the MXU via a masked ones-vector: padded
            # rows get weight 0 so no separate jnp.where pass is needed, and sum /
            # sum-of-squares come out in one sweep (one-pass variance).
            ones = (jax.lax.broadcasted_iota(jnp.int32, (1, ms), 1)
                    < rows_valid).astype(jnp.float32)
            s1 = jnp.dot(ones, y, preferred_element_type=jnp.float32)       # [1, tc]
            s2 = jnp.dot(ones, y * y, preferred_element_type=jnp.float32)   # [1, tc]

        if norm in ('inst', 'adain', 'batch'):
            inv_n = 1.0 / rows_valid
            mean = s1 * inv_n
            var = jnp.maximum(s2 * inv_n - mean * mean, 0.0)       # biased variance
            y = (y - mean) * jax.lax.rsqrt(var + eps) * s_ref[0] + t_ref[0]
        elif norm == 'ln':
            # Padded channels have zero weights & bias -> contribute 0 to both sums,
            # so only the element count needs the valid-channel correction.
            n = float(rows_valid * cout_valid)
            tot = jnp.sum(s1)
            tot2 = jnp.sum(s2)
            mean = tot / n
            var_u = jnp.maximum((tot2 - n * mean * mean) / (n - 1.0), 0.0)  # unbiased
            y = ((y - mean) / (jnp.sqrt(var_u) + eps)) * s_ref[0] + t_ref[0]
        # norm == 'none': nothing

        o_ref[0] = _apply_activation(y, act).astype(o_ref.dtype)   # single store pass


# ---------------------------------------------------------------------------------
# Forward glue (traced under jit, config baked in via functools.partial)
# ---------------------------------------------------------------------------------
def _conv_block_forward_impl(x, w_packed, bias_packed, scale_packed, shift_packed, *,
                             nhwc_in, nhwc_out, kh, kw, stride, padding, pad_type,
                             norm, act, eps, cout, K, Kp, Cp, tk, tc):
    if not nhwc_in:
        x = jnp.transpose(x, (0, 2, 3, 1))          # NCHW -> NHWC (channels = lanes)
    B = x.shape[0]
    if padding > 0:
        mode = 'reflect' if pad_type == 'reflect' else 'constant'
        x = jnp.pad(x, ((0, 0), (padding, padding), (padding, padding), (0, 0)),
                    mode=mode)
    _, Hp, Wp, Cin = x.shape
    Ho = (Hp - kh) // stride + 1
    Wo = (Wp - kw) // stride + 1
    HW = Ho * Wo

    # TODO(synk): build these patches inside the kernel (kh*kw shifted K-slices of
    # the padded NHWC input) to remove the kh*kw HBM amplification of im2col.
    patches = [x[:, i:i + stride * Ho:stride, j:j + stride * Wo:stride, :]
               for i in range(kh) for j in range(kw)]
    a = jnp.concatenate(patches, axis=-1).reshape(B, HW, K)   # K order = (kh, kw, Cin)

    if norm == 'batch':
        a = a.reshape(1, B * HW, K)            # batch-norm stats span the whole batch
    G, rows, _ = a.shape
    Ms = _round_up(rows, 16)                   # x16: full bf16 sublane packing
    a = jnp.pad(a, ((0, 0), (0, Ms - rows), (0, Kp - K))).astype(jnp.bfloat16)

    Kt = Kp // tk
    Cn = Cp // tc

    if norm == 'adain':
        aff_idx = lambda g, c, k: (g, 0, c)            # per-sample AdaIN affine
    else:
        aff_idx = lambda g, c, k: (0, 0, c)

    # VMEM budget: double-buffered a / w / out blocks + resident f32 accumulator.
    vmem_bytes = (2 * Ms * tk * 2 + 2 * tk * tc * 2 + 2 * Ms * tc * 4
                  + Ms * tc * 4 + 6 * 2 * tc * 4)
    vmem_limit = int(min(max(2 * vmem_bytes, 32 << 20), 96 << 20))

    out = pl.pallas_call(
        partial(_conv_block_kernel, norm=norm, act=act, eps=eps,
                rows_valid=rows, cout_valid=cout),
        out_shape=jax.ShapeDtypeStruct((G, Ms, Cp), jnp.float32),
        grid=(G, Cn, Kt),                              # K (reduction) axis last
        in_specs=[
            pl.BlockSpec((1, Ms, tk), lambda g, c, k: (g, 0, k)),
            pl.BlockSpec((tk, tc), lambda g, c, k: (k, c)),
            pl.BlockSpec((1, 1, tc), lambda g, c, k: (0, 0, c)),
            pl.BlockSpec((1, 1, tc), aff_idx),
            pl.BlockSpec((1, 1, tc), aff_idx),
        ],
        out_specs=pl.BlockSpec((1, Ms, tc), lambda g, c, k: (g, 0, c)),
        scratch_shapes=[pltpu.VMEM((Ms, tc), jnp.float32)],
        compiler_params=pltpu.CompilerParams(
            dimension_semantics=("parallel", "parallel", "arbitrary"),
            vmem_limit_bytes=vmem_limit),
    )(a, w_packed, bias_packed, scale_packed, shift_packed)

    y = out[:, :rows, :cout].reshape(B, Ho, Wo, cout)
    if not nhwc_out:
        y = jnp.transpose(y, (0, 3, 1, 2))             # back to NCHW
    return y


# ---------------------------------------------------------------------------------
# Conv2dBlock module (mirrors the PyTorch module's forward semantics)
# ---------------------------------------------------------------------------------
class Conv2dBlock:
    def __init__(self, input_dim, output_dim, kernel_size, stride, padding=0,
                 norm='none', activation='relu', pad_type='zero', *, key,
                 eps=1e-5, tk=None, tc=None):
        assert pad_type in ('reflect', 'zero')
        assert norm in ('none', 'inst', 'adain', 'ln', 'batch')
        assert activation in ('none', 'relu', 'lrelu', 'prelu', 'selu', 'tanh')
        self.norm = norm
        self.activation = activation
        self.cout = output_dim
        self.stride = stride
        self.padding = padding
        self.pad_type = pad_type
        self.kernel_size = kernel_size
        self.eps = eps

        k1, k2, k3 = jax.random.split(key, 3)
        fan = input_dim * kernel_size * kernel_size
        self.w_raw = jax.random.normal(
            k1, (output_dim, input_dim, kernel_size, kernel_size), jnp.float32) / jnp.sqrt(fan)
        self.b_raw = jax.random.normal(k2, (output_dim,), jnp.float32) * 0.01

        K = kernel_size * kernel_size * input_dim
        Kp = _round_up(K, 128)
        Cp = _round_up(output_dim, 128)
        self.K, self.Kp, self.Cp = K, Kp, Cp

        # tile sizes: tk matches the MXU contraction; tc = channel tile (128) for
        # per-channel-stat norms, full Cp for 'ln' (cross-channel stats in one block).
        if tk is None:
            tk = 256 if Kp % 256 == 0 else 128
        if tc is None:
            tc = Cp if norm == 'ln' else min(Cp, 128)
        assert Kp % tk == 0 and Cp % tc == 0
        self.tk, self.tc = tk, tc

        # --- pre-pack weight/bias to MXU layout ONCE ---
        wm = jnp.transpose(self.w_raw, (2, 3, 1, 0)).reshape(K, output_dim)  # (kh,kw,cin)->cout
        self.w_packed = (jnp.zeros((Kp, Cp), jnp.float32)
                         .at[:K, :output_dim].set(wm).astype(jnp.bfloat16))
        self.bias_packed = (jnp.zeros((1, 1, Cp), jnp.float32)
                            .at[0, 0, :output_dim].set(self.b_raw))

        # --- norm affine params, pre-padded to lane-dense slabs ---
        self.gamma = self.beta = None
        if norm == 'ln':
            self.gamma = jax.random.uniform(k3, (output_dim,), jnp.float32)  # .uniform_()
            self.beta = jnp.zeros((output_dim,), jnp.float32)
            self.scale_packed = (jnp.zeros((1, 1, Cp), jnp.float32)
                                 .at[0, 0, :output_dim].set(self.gamma))
            self.shift_packed = (jnp.zeros((1, 1, Cp), jnp.float32)
                                 .at[0, 0, :output_dim].set(self.beta))
        elif norm == 'adain':
            self.scale_packed = None   # assigned at call time (AdaIN weight/bias)
            self.shift_packed = None
        else:   # 'none', 'inst' (affine=False), 'batch' (weight=1, bias=0 at init)
            self.scale_packed = (jnp.zeros((1, 1, Cp), jnp.float32)
                                 .at[0, 0, :output_dim].set(jnp.ones((output_dim,), jnp.float32)))
            self.shift_packed = jnp.zeros((1, 1, Cp), jnp.float32)

        # TODO(synk): BatchNorm/AdaIN running-stat buffer updates (momentum) are not
        # materialized; they do not affect the forward output in training-mode norm.
        self._fwd_cache = {}

    def _get_fwd(self, nhwc_in, nhwc_out):
        cache_key = (nhwc_in, nhwc_out)
        if cache_key not in self._fwd_cache:
            self._fwd_cache[cache_key] = jax.jit(partial(
                _conv_block_forward_impl,
                nhwc_in=nhwc_in, nhwc_out=nhwc_out,
                kh=self.kernel_size, kw=self.kernel_size, stride=self.stride,
                padding=self.padding, pad_type=self.pad_type, norm=self.norm,
                act=self.activation, eps=self.eps, cout=self.cout,
                K=self.K, Kp=self.Kp, Cp=self.Cp, tk=self.tk, tc=self.tc))
        return self._fwd_cache[cache_key]

    def __call__(self, x, adain_weight=None, adain_bias=None,
                 nhwc_in=False, nhwc_out=False):
        if self.norm == 'adain':
            assert adain_weight is not None and adain_bias is not None, \
                'Please assign weight and bias before calling AdaIN!'
            B = x.shape[0]
            scale = (jnp.zeros((B, 1, self.Cp), jnp.float32)
                     .at[:, 0, :self.cout].set(adain_weight.reshape(B, self.cout)))
            shift = (jnp.zeros((B, 1, self.Cp), jnp.float32)
                     .at[:, 0, :self.cout].set(adain_bias.reshape(B, self.cout)))
        else:
            scale, shift = self.scale_packed, self.shift_packed
        return self._get_fwd(nhwc_in, nhwc_out)(
            x, self.w_packed, self.bias_packed, scale, shift)

    # Pure-XLA reference (f32, HIGHEST precision) matching the PyTorch module.
    def reference(self, x, adain_weight=None, adain_bias=None):
        p = self.padding
        if p > 0:
            mode = 'reflect' if self.pad_type == 'reflect' else 'constant'
            xp = jnp.pad(x, ((0, 0), (0, 0), (p, p), (p, p)), mode=mode)
        else:
            xp = x
        y = jax.lax.conv_general_dilated(
            xp, self.w_raw, (self.stride, self.stride), 'VALID',
            dimension_numbers=('NCHW', 'OIHW', 'NCHW'),
            precision=jax.lax.Precision.HIGHEST)
        y = y + self.b_raw.reshape(1, -1, 1, 1)
        eps = self.eps
        if self.norm in ('inst', 'adain'):
            m = jnp.mean(y, axis=(2, 3), keepdims=True)
            v = jnp.mean((y - m) ** 2, axis=(2, 3), keepdims=True)
            y = (y - m) / jnp.sqrt(v + eps)
            if self.norm == 'adain':
                Bn, Cn = y.shape[0], y.shape[1]
                y = (y * adain_weight.reshape(Bn, Cn, 1, 1)
                     + adain_bias.reshape(Bn, Cn, 1, 1))
        elif self.norm == 'batch':
            m = jnp.mean(y, axis=(0, 2, 3), keepdims=True)
            v = jnp.mean((y - m) ** 2, axis=(0, 2, 3), keepdims=True)
            y = (y - m) / jnp.sqrt(v + eps)
        elif self.norm == 'ln':
            Bn = y.shape[0]
            flat = y.reshape(Bn, -1)
            m = flat.mean(axis=1).reshape(Bn, 1, 1, 1)
            std = jnp.std(flat, axis=1, ddof=1).reshape(Bn, 1, 1, 1)
            y = (y - m) / (std + eps)
            y = y * self.gamma.reshape(1, -1, 1, 1) + self.beta.reshape(1, -1, 1, 1)
        return _apply_activation(y, self.activation)


# ---------------------------------------------------------------------------------
if __name__ == "__main__":
    key = jax.random.PRNGKey(0)
    kx, k1, k2, k3, k4, k5, k6, kw_, kb_ = jax.random.split(key, 9)

    B, Cin, H, W = 2, 4, 16, 16
    x = jax.random.normal(kx, (B, Cin, H, W), jnp.float32)

    blocks = [
        ('inst_relu_reflect',
         Conv2dBlock(Cin, 8, 3, 1, padding=1, norm='inst', activation='relu',
                     pad_type='reflect', key=k1), False),
        ('ln_lrelu_reflect_s2',
         Conv2dBlock(Cin, 16, 4, 2, padding=1, norm='ln', activation='lrelu',
                     pad_type='reflect', key=k2), False),
        ('adain_relu_reflect_ktiled',          # Kp=256, tk=128 -> exercises K grid axis
         Conv2dBlock(Cin, 8, 7, 1, padding=3, norm='adain', activation='relu',
                     pad_type='reflect', key=k3, tk=128), True),
        ('none_tanh_zero',
         Conv2dBlock(Cin, 3, 3, 1, padding=1, norm='none', activation='tanh',
                     pad_type='zero', key=k4), False),
        ('batch_selu_zero',
         Conv2dBlock(Cin, 8, 3, 1, padding=1, norm='batch', activation='selu',
                     pad_type='zero', key=k5), False),
        ('inst_relu_zero_ctiled',              # Cp=256, tc=128 -> exercises channel axis
         Conv2dBlock(Cin, 160, 3, 1, padding=1, norm='inst', activation='relu',
                     pad_type='zero', key=k6), False),
    ]

    # AdaIN params (as produced by the MLP), flat [B * C] like the PyTorch module
    adain_w = 1.0 + 0.1 * jax.random.normal(kw_, (B * 8,), jnp.float32)
    adain_b = 0.1 * jax.random.normal(kb_, (B * 8,), jnp.float32)

    for name, blk, is_adain in blocks:
        if is_adain:
            y = blk(x, adain_weight=adain_w, adain_bias=adain_b)
            y_ref = blk.reference(x, adain_weight=adain_w, adain_bias=adain_b)
        else:
            y = blk(x)
            y_ref = blk.reference(x)
        y = jax.block_until_ready(y)
        y_ref = jax.block_until_ready(y_ref)
        assert y.shape == y_ref.shape, (name, y.shape, y_ref.shape)
        assert y.dtype == jnp.float32
        err = float(jnp.max(jnp.abs(y - y_ref)))
        assert err < 5e-2, (name, err)   # bf16 MXU vs f32 reference tolerance

    # NHWC pass-through path (chained Conv2dBlocks can skip NCHW<->NHWC relayouts)
    blk0 = blocks[0][1]
    x_nhwc = jnp.transpose(x, (0, 2, 3, 1))
    y_nhwc = jax.block_until_ready(blk0(x_nhwc, nhwc_in=True, nhwc_out=True))
    y_ref0 = jnp.transpose(blk0.reference(x), (0, 2, 3, 1))
    assert y_nhwc.shape == y_ref0.shape
    err = float(jnp.max(jnp.abs(y_nhwc - y_ref0)))
    assert err < 5e-2, ('nhwc_passthrough', err)

    print("KERNEL_OK")
</pallas_src>

<mosaic_0001>
module attributes {stable_mosaic.version = 11 : i64} {
  func.func @_conv_block_kernel(%arg0: i32, %arg1: i32, %arg2: i32, %arg3: memref<1x256x128xbf16, #tpu.memory_space<vmem>>, %arg4: memref<128x128xbf16, #tpu.memory_space<vmem>>, %arg5: memref<1x1x128xf32, #tpu.memory_space<vmem>>, %arg6: memref<1x1x128xf32, #tpu.memory_space<vmem>>, %arg7: memref<1x1x128xf32, #tpu.memory_space<vmem>>, %arg8: memref<1x256x128xf32, #tpu.memory_space<vmem>>, %arg9: memref<256x128xf32, #tpu.memory_space<vmem>>) attributes {dimension_semantics = [#tpu.dimension_semantics<parallel>, #tpu.dimension_semantics<parallel>, #tpu.dimension_semantics<arbitrary>], iteration_bounds = array<i64: 2, 1, 1>, scalar_prefetch = 0 : i64, scratch_operands = 1 : i64, tpu.core_type = #tpu.core_type<tc>, window_params = [{transform_indices = @transform_0, window_bounds = array<i64: 1, 256, 128>}, {transform_indices = @transform_1, window_bounds = array<i64: 128, 128>}, {transform_indices = @transform_2, window_bounds = array<i64: 1, 1, 128>}, {transform_indices = @transform_3, window_bounds = array<i64: 1, 1, 128>}, {transform_indices = @transform_4, window_bounds = array<i64: 1, 1, 128>}, {transform_indices = @transform_5, window_bounds = array<i64: 1, 256, 128>}]} {
    %c0_i32 = arith.constant 0 : i32
    %0 = arith.cmpi eq, %arg2, %c0_i32 : i32
    %1 = arith.extui %0 : i1 to i32
    %c0_i32_0 = arith.constant 0 : i32
    %2 = arith.cmpi ne, %1, %c0_i32_0 : i32
    scf.if %2 {
      %cst_11 = arith.constant 0.000000e+00 : f32
      %13 = vector.broadcast %cst_11 : f32 to vector<256x128xf32>
      %c0_12 = arith.constant 0 : index
      %c0_13 = arith.constant 0 : index
      %14 = vector.load %arg9[%c0_12, %c0_13] : memref<256x128xf32, #tpu.memory_space<vmem>>, vector<256x128xf32>
      tpu.vector_store %arg9[%c0_12, %c0_13], %13 {strides = array<i32>} : memref<256x128xf32, #tpu.memory_space<vmem>>, vector<256x128xf32>,
    } else {
    }
    %c0 = arith.constant 0 : index
    %c0_1 = arith.constant 0 : index
    %3 = vector.load %arg9[%c0, %c0_1] : memref<256x128xf32, #tpu.memory_space<vmem>>, vector<256x128xf32>
    %c0_2 = arith.constant 0 : index
    %c0_3 = arith.constant 0 : index
    %c0_4 = arith.constant 0 : index
    %4 = vector.load %arg3[%c0_2, %c0_3, %c0_4] : memref<1x256x128xbf16, #tpu.memory_space<vmem>>, vector<1x256x128xbf16>
    %5 = vector.shape_cast %4 : vector<1x256x128xbf16> to vector<256x128xbf16>
    %c0_5 = arith.constant 0 : index
    %c0_6 = arith.constant 0 : index
    %6 = vector.load %arg4[%c0_5, %c0_6] : memref<128x128xbf16, #tpu.memory_space<vmem>>, vector<128x128xbf16>
    %cst = arith.constant dense<0.000000e+00> : vector<256x128xf32>
    %7 = tpu.matmul %5, %6, %cst {dimension_numbers = #tpu.dot_dimension_numbers<[1], [0], [0], [1], [0, 0, 1, 1], [], []>} : vector<256x128xbf16>, vector<128x128xbf16>, vector<256x128xf32> -> vector<256x128xf32>
    %8 = arith.addf %3, %7 : vector<256x128xf32>
    %c0_7 = arith.constant 0 : index
    %c0_8 = arith.constant 0 : index
    %9 = vector.load %arg9[%c0_7, %c0_8] : memref<256x128xf32, #tpu.memory_space<vmem>>, vector<256x128xf32>
    tpu.vector_store %arg9[%c0_7, %c0_8], %8 {strides = array<i32>} : memref<256x128xf32, #tpu.memory_space<vmem>>, vector<256x128xf32>,
    %c0_i32_9 = arith.constant 0 : i32
    %10 = arith.cmpi eq, %arg2, %c0_i32_9 : i32
    %11 = arith.extui %10 : i1 to i32
    %c0_i32_10 = arith.constant 0 : i32
    %12 = arith.cmpi ne, %11, %c0_i32_10 : i32
    scf.if %12 {
      %c0_11 = arith.constant 0 : index
      %c0_12 = arith.constant 0 : index
      %13 = vector.load %arg9[%c0_11, %c0_12] : memref<256x128xf32, #tpu.memory_space<vmem>>, vector<256x128xf32>
      %c0_13 = arith.constant 0 : index
      %c0_14 = arith.constant 0 : index
      %c0_15 = arith.constant 0 : index
      %14 = vector.load %arg5[%c0_13, %c0_14, %c0_15] : memref<1x1x128xf32, #tpu.memory_space<vmem>>, vector<1x1x128xf32>
      %15 = vector.shape_cast %14 : vector<1x1x128xf32> to vector<1x128xf32>
      %16 = vector.broadcast %15 : vector<1x128xf32> to vector<256x128xf32>
      %17 = arith.addf %13, %16 : vector<256x128xf32>
      %18 = tpu.iota {dimensions = array<i32: 1>} : vector<1x256xi32>
      %c256_i32 = arith.constant 256 : i32
      %19 = vector.broadcast %c256_i32 : i32 to vector<1x256xi32>
      %20 = arith.cmpi slt, %18, %19 : vector<1x256xi32>
      %21 = arith.extui %20 : vector<1x256xi1> to vector<1x256xi32>
      %22 = arith.sitofp %21 : vector<1x256xi32> to vector<1x256xf32>
      %cst_16 = arith.constant dense<0.000000e+00> : vector<1x128xf32>
      %23 = tpu.matmul %22, %17, %cst_16 {dimension_numbers = #tpu.dot_dimension_numbers<[1], [0], [0], [1], [0, 0, 1, 1], [], []>} : vector<1x256xf32>, vector<256x128xf32>, vector<1x128xf32> -> vector<1x128xf32>
      %24 = arith.mulf %17, %17 : vector<256x128xf32>
      %cst_17 = arith.constant dense<0.000000e+00> : vector<1x128xf32>
      %25 = tpu.matmul %22, %24, %cst_17 {dimension_numbers = #tpu.dot_dimension_numbers<[1], [0], [0], [1], [0, 0, 1, 1], [], []>} : vector<1x256xf32>, vector<256x128xf32>, vector<1x128xf32> -> vector<1x128xf32>
      %cst_18 = arith.constant 3.906250e-03 : f32
      %26 = vector.broadcast %cst_18 : f32 to vector<1x128xf32>
      %27 = arith.mulf %23, %26 : vector<1x128xf32>
      %cst_19 = arith.constant 3.906250e-03 : f32
      %28 = vector.broadcast %cst_19 : f32 to vector<1x128xf32>
      %29 = arith.mulf %25, %28 : vector<1x128xf32>
      %30 = arith.mulf %27, %27 : vector<1x128xf32>
      %31 = arith.subf %29, %30 : vector<1x128xf32>
      %cst_20 = arith.constant 0.000000e+00 : f32
      %32 = vector.broadcast %cst_20 : f32 to vector<1x128xf32>
      %33 = arith.maximumf %31, %32 : vector<1x128xf32>
      %34 = vector.broadcast %27 : vector<1x128xf32> to vector<256x128xf32>
      %35 = arith.subf %17, %34 : vector<256x128xf32>
      %cst_21 = arith.constant 9.99999974E-6 : f32
      %36 = vector.broadcast %cst_21 : f32 to vector<1x128xf32>
      %37 = arith.addf %33, %36 : vector<1x128xf32>
      %38 = math.rsqrt %37 : vector<1x128xf32>
      %39 = vector.broadcast %38 : vector<1x128xf32> to vector<256x128xf32>
      %40 = arith.mulf %35, %39 : vector<256x128xf32>
      %c0_22 = arith.constant 0 : index
      %c0_23 = arith.constant 0 : index
      %c0_24 = arith.constant 0 : index
      %41 = vector.load %arg6[%c0_22, %c0_23, %c0_24] : memref<1x1x128xf32, #tpu.memory_space<vmem>>, vector<1x1x128xf32>
      %42 = vector.shape_cast %41 : vector<1x1x128xf32> to vector<1x128xf32>
      %43 = vector.broadcast %42 : vector<1x128xf32> to vector<256x128xf32>
      %44 = arith.mulf %40, %43 : vector<256x128xf32>
      %c0_25 = arith.constant 0 : index
      %c0_26 = arith.constant 0 : index
      %c0_27 = arith.constant 0 : index
      %45 = vector.load %arg7[%c0_25, %c0_26, %c0_27] : memref<1x1x128xf32, #tpu.memory_space<vmem>>, vector<1x1x128xf32>
      %46 = vector.shape_cast %45 : vector<1x1x128xf32> to vector<1x128xf32>
      %47 = vector.broadcast %46 : vector<1x128xf32> to vector<256x128xf32>
      %48 = arith.addf %44, %47 : vector<256x128xf32>
      %cst_28 = arith.constant 0.000000e+00 : f32
      %49 = vector.broadcast %cst_28 : f32 to vector<256x128xf32>
      %50 = arith.maximumf %48, %49 : vector<256x128xf32>
      %c0_29 = arith.constant 0 : index
      %c0_30 = arith.constant 0 : index
      %c0_31 = arith.constant 0 : index
      %51 = vector.load %arg8[%c0_29, %c0_30, %c0_31] : memref<1x256x128xf32, #tpu.memory_space<vmem>>, vector<1x256x128xf32>
      %52 = vector.shape_cast %51 : vector<1x256x128xf32> to vector<256x128xf32>
      %53 = vector.shape_cast %50 : vector<256x128xf32> to vector<1x256x128xf32>
      tpu.vector_store %arg8[%c0_29, %c0_30, %c0_31], %53 {strides = array<i32>} : memref<1x256x128xf32, #tpu.memory_space<vmem>>, vector<1x256x128xf32>,
    } else {
    }
    return
  }
  func.func @transform_0(%arg0: i32, %arg1: i32, %arg2: i32) -> (i32, i32, i32) {
    %c0_i32 = arith.constant 0 : i32
    %c0_i32_0 = arith.constant 0 : i32
    return %arg0, %c0_i32, %arg2 : i32, i32, i32
  }
  func.func @transform_1(%arg0: i32, %arg1: i32, %arg2: i32) -> (i32, i32) {
    %c0_i32 = arith.constant 0 : i32
    return %arg2, %arg1 : i32, i32
  }
  func.func @transform_2(%arg0: i32, %arg1: i32, %arg2: i32) -> (i32, i32, i32) {
    %c0_i32 = arith.constant 0 : i32
    %c0_i32_0 = arith.constant 0 : i32
    %c0_i32_1 = arith.constant 0 : i32
    return %c0_i32, %c0_i32_0, %arg1 : i32, i32, i32
  }
  func.func @transform_3(%arg0: i32, %arg1: i32, %arg2: i32) -> (i32, i32, i32) {
    %c0_i32 = arith.constant 0 : i32
    %c0_i32_0 = arith.constant 0 : i32
    %c0_i32_1 = arith.constant 0 : i32
    return %c0_i32, %c0_i32_0, %arg1 : i32, i32, i32
  }
  func.func @transform_4(%arg0: i32, %arg1: i32, %arg2: i32) -> (i32, i32, i32) {
    %c0_i32 = arith.constant 0 : i32
    %c0_i32_0 = arith.constant 0 : i32
    %c0_i32_1 = arith.constant 0 : i32
    return %c0_i32, %c0_i32_0, %arg1 : i32, i32, i32
  }
  func.func @transform_5(%arg0: i32, %arg1: i32, %arg2: i32) -> (i32, i32, i32) {
    %c0_i32 = arith.constant 0 : i32
    %c0_i32_0 = arith.constant 0 : i32
    return %arg0, %c0_i32, %arg1 : i32, i32, i32
  }
}

</mosaic_0001>

<bundles_post_ra>
// kernel: _conv_block_forward_impl.1
= control target key start
LH: loop header
LB: loop body
LE: loop exit
PB: predicated region body
PF: predicated region fallthrough
CT: control target
= control target key end

     0   :  { %s1540_s18 = smov 0   ;;  %s1542_s19 = smov 0   ;;  %s2095_s0 = inlined_call_operand.vmem [shape: bf16[2,256,128], index: 0, kind: input, shape index: {}]   ;;  %s2096_s1 = inlined_call_operand.vmem [shape: bf16[128,128], index: 1, kind: input, shape index: {}]   ;;  %s2097_s2 = inlined_call_operand.vmem [shape: f32[1,1,128], index: 2, kind: input, shape index: {}]   ;;  %s2098_s3 = inlined_call_operand.vmem [shape: f32[1,1,128], index: 3, kind: input, shape index: {}]   ;;  %s2099_s4 = inlined_call_operand.vmem [shape: f32[1,1,128], index: 4, kind: input, shape index: {}]   ;;  %s2100_s5 = inlined_call_operand.vmem [shape: f32[2,256,128], index: 5, kind: output, shape index: {}]  }
   0x1   :  { %s1544_s20 = smov 0  }
   0x2 LB: > { %s34_s21 = sadd.s32 1, %s1503_s19  ;;  %p1310_p0 = scmp.ge.s32.totalorder %s1507_s20, 1  ;;  %s1507_s20 = sphi %s1544_s20, %s15_s20   ;;  %s1503_s19 = sphi %s1542_s19, %s2102_s19   ;;  %s1499_s18 = sphi %s1540_s18, %s2101_s18  }
   0x3   : > { %p36_p1 = scmp.ge.s32.totalorder %s34_s21, 2  ;;  %p253_p2 = scmp.lt.s32.totalorder %s1507_s20, 3 }
   0x5   : > { %s2104_s21 = smov (%p36_p1, %s34_s21), 0  ;;  %p254_p3 = pnand %p1310_p0, %p253_p2 }
   0x6   : > { %p304_p4 = scmp.lt.s32.totalorder (!%p254_p3), %s1499_s18, 1 }
   0x7   : > { %257 = sbr.rel (%p254_p3) target bundleno = 525 (0x20d), region = 40 }
   0xc   : > { %v1438_v0 = vld [vmem:[%s2096_s1 + $0x38] sm:$0xff]  ;;  %v1437_v1 = vld [vmem:[%s2096_s1 + $0x30] sm:$0xff]  ;;  %v1436_v2 = vld [vmem:[%s2096_s1 + $0x28] sm:$0xff]  ;;  %s2106_s18 = smov (!%p304_p4, %s1499_s18), 1 }
   0xd   : > { %598 = vmatpush.bf16.msra.mxu0 %v1438_v0  ;;  %1439 = vmatpush.bf16.msra.mxu2 %v1438_v0  ;;  %v1435_v3 = vld [vmem:[%s2096_s1 + $0x20] sm:$0xff]  ;;  %v1434_v4 = vld [vmem:[%s2096_s1 + $0x18] sm:$0xff]  ;;  %v1433_v5 = vld [vmem:[%s2096_s1 + $0x10] sm:$0xff]  ;;  %s1413_s11 = sshll.u32 %s2106_s18, 7  ;;  %s1414_s27 = sshll.u32 %s2106_s18, 8 }
   0xe   : > { %1440 = vmatpush.bf16.msra.mxu3 %v1438_v0  ;;  %v1432_v6 = vld [vmem:[%s2096_s1 + $0x8] sm:$0xff]  ;;  %v1431_v7 = vld [vmem:[%s2096_s1] sm:$0xff]  ;;  %s1592_s16 = scalar_lea.vmem %s2095_s0, %s1413_s11  ;;  %s1942_s29 = scalar_lea.vmem %s2100_s5, %s1414_s27 }
   0xf   : > { %v1415_v8 = vld [vmem:[%s1592_s16] sm:$0xff]  ;;  %v1420_v9 = vld [vmem:[%s1592_s16 + $0x28] sm:$0xff]  ;;  %v1425_v10 = vld [vmem:[%s1592_s16 + $0x50] sm:$0xff] }
  0x10   : > { %v1416_v11 = vld [vmem:[%s1592_s16 + $0x8] sm:$0xff]  ;;  %v1421_v12 = vld [vmem:[%s1592_s16 + $0x30] sm:$0xff]  ;;  %v1426_v13 = vld [vmem:[%s1592_s16 + $0x58] sm:$0xff] }
  0x11   : > { %599 = vmatpush.bf16.msra.mxu0 %v1437_v1  ;;  %1441 = vmatpush.bf16.msra.mxu2 %v1437_v1  ;;  %v1417_v14 = vld [vmem:[%s1592_s16 + $0x10] sm:$0xff]  ;;  %v1422_v15 = vld [vmem:[%s1592_s16 + $0x38] sm:$0xff]  ;;  %v1427_v16 = vld [vmem:[%s1592_s16 + $0x60] sm:$0xff] }
  0x12   : > { %1442 = vmatpush.bf16.msra.mxu3 %v1437_v1  ;;  %v1418_v17 = vld [vmem:[%s1592_s16 + $0x18] sm:$0xff]  ;;  %v1428_v18 = vld [vmem:[%s1592_s16 + $0x68] sm:$0xff]  ;;  %v1423_v19 = vld [vmem:[%s1592_s16 + $0x40] sm:$0xff] }
  0x13   : > { %v1419_v20 = vld [vmem:[%s1592_s16 + $0x20] sm:$0xff]  ;;  %v1429_v21 = vld [vmem:[%s1592_s16 + $0x70] sm:$0xff]  ;;  %v1424_v22 = vld [vmem:[%s1592_s16 + $0x48] sm:$0xff] }
  0x14   : > { %v1430_v23 = vld [vmem:[%s1592_s16 + $0x78] sm:$0xff]  ;;  %v1623_v40 = vld [vmem:[%s2097_s2] ss:$0 sm:$0xff] }
  0x15   : > { %600 = vmatpush.bf16.msra.mxu0 %v1436_v2  ;;  %1443 = vmatpush.bf16.msra.mxu2 %v1436_v2 }
  0x16   : > { %1444 = vmatpush.bf16.msra.mxu3 %v1436_v2 }
  0x19   : > { %601 = vmatpush.bf16.msra.mxu0 %v1435_v3  ;;  %1445 = vmatpush.bf16.msra.mxu2 %v1435_v3 }
  0x1a   : > { %1446 = vmatpush.bf16.msra.mxu3 %v1435_v3 }
  0x1d   : > { %602 = vmatpush.bf16.msra.mxu0 %v1434_v4  ;;  %1447 = vmatpush.bf16.msra.mxu2 %v1434_v4 }
  0x1e   : > { %1448 = vmatpush.bf16.msra.mxu3 %v1434_v4 }
  0x21   : > { %603 = vmatpush.bf16.msra.mxu0 %v1433_v5  ;;  %1449 = vmatpush.bf16.msra.mxu2 %v1433_v5 }
  0x22   : > { %1450 = vmatpush.bf16.msra.mxu3 %v1433_v5 }
  0x25   : > { %604 = vmatpush.bf16.msra.mxu0 %v1432_v6  ;;  %1451 = vmatpush.bf16.msra.mxu2 %v1432_v6 }
  0x26   : > { %1452 = vmatpush.bf16.msra.mxu3 %v1432_v6 }
  0x29   : > { %605 = vmatpush.bf16.msra.mxu0 %v1431_v7  ;;  %1453 = vmatpush.bf16.msra.mxu2 %v1431_v7 }
  0x2a   : > { %1454 = vmatpush.bf16.msra.mxu3 %v1431_v7 }
  0x2c   : > { %606 = vmatmul.bf16.vlgmr.msra.gmra.mxu0 %v1415_v8  ;;  %631 = vmatmul.bf16.vlgmr.msra.gmra.mxu2 %v1420_v9  ;;  %v1509_v9 = vmov 1.0  }
  0x2d   : > { %656 = vmatmul.bf16.vlgmr.msra.gmra.mxu3 %v1425_v10 }
  0x3c   : > { %611 = vmatmul.bf16.gmra.mxu0 %v1416_v11  ;;  %636 = vmatmul.bf16.gmra.mxu2 %v1421_v12 }
  0x3d   : > { %661 = vmatmul.bf16.gmra.mxu3 %v1426_v13 }
  0x4c   : > { %616 = vmatmul.bf16.gmra.mxu0 %v1417_v14  ;;  %641 = vmatmul.bf16.gmra.mxu2 %v1422_v15 }
  0x4d   : > { %666 = vmatmul.bf16.gmra.mxu3 %v1427_v16 }
  0x5c   : > { %621 = vmatmul.bf16.gmra.mxu0 %v1418_v17  ;;  %646 = vmatmul.bf16.gmra.mxu2 %v1423_v19 }
  0x5d   : > { %671 = vmatmul.bf16.gmra.mxu3 %v1428_v18 }
  0x6c   : > { %626 = vmatmul.bf16.gmra.mxu0 %v1419_v20  ;;  %651 = vmatmul.bf16.gmra.mxu2 %v1424_v22 }
  0x6d   : > { %676 = vmatmul.bf16.gmra.mxu3 %v1429_v21 }
  0x7d   : > { %681 = vmatmul.bf16.gmra.mxu3 %v1430_v23 }
  0xa9   : > { %v607_v24 = vpop.f32.mrf.mxu0 }
  0xaa   : > { %v1689_v4 = vadd.f32 %v1623_v40, %v607_v24 }
  0xaf   : > { %v632_v25 = vpop.f32.mrf.mxu2 }
  0xb0   : > { %v1610_v26 = vpop.f32.mrf.mxu3  ;;  %v1647_v51 = vadd.f32 %v1623_v40, %v632_v25 }
  0xb1   : > { %v609_v27 = vpop.f32.mrf.mxu0 }
  0xb2   : > { %v1685_v3 = vadd.f32 %v1623_v40, %v609_v27  ;;  %v881_v17 = vmul.f32 %v1647_v51, %v1647_v51 }
  0xb7   : > { %v634_v28 = vpop.f32.mrf.mxu2 }
  0xb8   : > { %v1612_v29 = vpop.f32.mrf.mxu3  ;;  %v1643_v48 = vadd.f32 %v1623_v40, %v634_v28 }
  0xb9   : > { %v612_v30 = vpop.f32.mrf.mxu0 }
  0xba   : > { %v1681_v1 = vadd.f32 %v1623_v40, %v612_v30  ;;  %v882_v15 = vmul.f32 %v1643_v48, %v1643_v48 }
  0xbf   : > { %v637_v31 = vpop.f32.mrf.mxu2 }
  0xc0   : > { %v1614_v32 = vpop.f32.mrf.mxu3  ;;  %v1639_v47 = vadd.f32 %v1623_v40, %v637_v31 }
  0xc1   : > { %v614_v33 = vpop.f32.mrf.mxu0  ;;  %v1756_v31 = vadd.f32 %v1623_v40, %v1614_v32  ;;  %v1770_v32 = vadd.f32 %v1623_v40, %v1610_v26  ;;  %v871_v26 = vmul.f32 %v1689_v4, %v1689_v4 }
  0xc2   : > { %v1675_v63 = vadd.f32 %v1623_v40, %v614_v33  ;;  %v883_v13 = vmul.f32 %v1639_v47, %v1639_v47 }
  0xc7   : > { %v639_v34 = vpop.f32.mrf.mxu2 }
  0xc8   : > { %v1616_v35 = vpop.f32.mrf.mxu3  ;;  %v1635_v46 = vadd.f32 %v1623_v40, %v639_v34 }
  0xc9   : > { %v617_v36 = vpop.f32.mrf.mxu0  ;;  %v1749_v28 = vadd.f32 %v1623_v40, %v1616_v35  ;;  %v1763_v35 = vadd.f32 %v1623_v40, %v1612_v29  ;;  %v873_v29 = vmul.f32 %v1681_v1, %v1681_v1 }
  0xca   : > { %v1671_v62 = vadd.f32 %v1623_v40, %v617_v36  ;;  %v884_v12 = vmul.f32 %v1635_v46, %v1635_v46  ;;  %v874_v36 = vmul.f32 %v1675_v63, %v1675_v63 }
  0xcc   : > { %v875_v33 = vmul.f32 %v1671_v62, %v1671_v62 }
  0xcf   : > { %v642_v37 = vpop.f32.mrf.mxu2 }
  0xd0   : > { %v1618_v38 = vpop.f32.mrf.mxu3  ;;  %v1626_v42 = vadd.f32 %v1623_v40, %v642_v37 }
  0xd1   : > { %v619_v39 = vpop.f32.mrf.mxu0  ;;  %v1742_v25 = vadd.f32 %v1623_v40, %v1618_v38 }
  0xd2   : > { %v1667_v61 = vadd.f32 %v1623_v40, %v619_v39  ;;  %v885_v6 = vmul.f32 %v1626_v42, %v1626_v42  ;;  %v872_v39 = vmul.f32 %v1685_v3, %v1685_v3 }
  0xd4   : > { %v876_v30 = vmul.f32 %v1667_v61, %v1667_v61 }
  0xd7   : > { %v644_v41 = vpop.f32.mrf.mxu2 }
  0xd8   : > { %v1629_v43 = vadd.f32 %v1623_v40, %v644_v41  ;;  %v1631_v44 = vpop.f32.mrf.mxu3 }
  0xd9   : > { %v622_v45 = vpop.f32.mrf.mxu0  ;;  %v1735_v23 = vadd.f32 %v1623_v40, %v1631_v44 }
  0xda   : > { %831 = vmatpush.msra.mxu1 %v1629_v43  ;;  %v1663_v59 = vadd.f32 %v1623_v40, %v622_v45  ;;  %v886_v5 = vmul.f32 %v1629_v43, %v1629_v43 }
  0xdc   : > { %832 = vmatpush.msra.mxu1 %v1626_v42  ;;  %v877_v27 = vmul.f32 %v1663_v59, %v1663_v59 }
  0xde   : > { %833 = vmatpush.msra.mxu1 %v1635_v46 }
  0xdf   : > { %v1678_v0 = vpop.f32.mrf.mxu2 }
  0xe0   : > { %v672_v49 = vpop.f32.mrf.mxu3  ;;  %834 = vmatpush.msra.mxu1 %v1639_v47 }
  0xe1   : > { %v624_v50 = vpop.f32.mrf.mxu0  ;;  %v1728_v21 = vadd.f32 %v1623_v40, %v672_v49  ;;  %v1797_v49 = vadd.f32 %v1623_v40, %v1678_v0  ;;  %v893_v0 = vmul.f32 %v1756_v31, %v1756_v31 }
  0xe2   : > { %835 = vmatpush.msra.mxu1 %v1643_v48  ;;  %v1659_v58 = vadd.f32 %v1623_v40, %v624_v50 }
  0xe4   : > { %836 = vmatpush.msra.mxu1 %v1647_v51  ;;  %v878_v24 = vmul.f32 %v1659_v58, %v1659_v58 }
  0xe7   : > { %v649_v8 = vpop.f32.mrf.mxu2 }
  0xe8   : > { %v674_v52 = vpop.f32.mrf.mxu3  ;;  %v1790_v44 = vadd.f32 %v1623_v40, %v649_v8 }
  0xe9   : > { %v627_v53 = vpop.f32.mrf.mxu0  ;;  %v1722_v18 = vadd.f32 %v1623_v40, %v674_v52 }
  0xea   : > { %v1655_v57 = vadd.f32 %v1623_v40, %v627_v53  ;;  %v897_v53 = vmul.f32 %v1728_v21, %v1728_v21  ;;  %v888_v8 = vmul.f32 %v1790_v44, %v1790_v44 }
  0xec   : > { %v879_v22 = vmul.f32 %v1655_v57, %v1655_v57 }
  0xef   : > { %v652_v20 = vpop.f32.mrf.mxu2 }
  0xf0   : > { %v677_v54 = vpop.f32.mrf.mxu3  ;;  %v1779_v38 = vadd.f32 %v1623_v40, %v652_v20 }
  0xf1   : > { %v629_v55 = vpop.f32.mrf.mxu0  ;;  %v1716_v16 = vadd.f32 %v1623_v40, %v677_v54  ;;  %v896_v54 = vmul.f32 %v1735_v23, %v1735_v23 }
  0xf2   : > { %v1652_v56 = vadd.f32 %v1623_v40, %v629_v55  ;;  %v895_v55 = vmul.f32 %v1742_v25, %v1742_v25 }
  0xf3   : > { %v899_v52 = vmul.f32 %v1716_v16, %v1716_v16 }
  0xf4   : > { %837 = vmatpush.msra.mxu1 %v1652_v56  ;;  %v880_v19 = vmul.f32 %v1652_v56, %v1652_v56 }
  0xf6   : > { %838 = vmatpush.msra.mxu1 %v1655_v57 }
  0xf7   : > { %v654_v34 = vpop.f32.mrf.mxu2 }
  0xf8   : > { %v679_v60 = vpop.f32.mrf.mxu3  ;;  %839 = vmatpush.msra.mxu1 %v1659_v58  ;;  %v1774_v37 = vadd.f32 %v1623_v40, %v654_v34 }
  0xf9   : > { %v1710_v14 = vadd.f32 %v1623_v40, %v679_v60  ;;  %v894_v60 = vmul.f32 %v1749_v28, %v1749_v28 }
  0xfa   : > { %840 = vmatpush.msra.mxu1 %v1663_v59 }
  0xfb   : > { %v900_v50 = vmul.f32 %v1710_v14, %v1710_v14 }
  0xfc   : > { %841 = vmatpush.msra.mxu1 %v1667_v61 }
  0xfe   : > { %842 = vmatpush.msra.mxu1 %v1671_v62 }
 0x100   : > { %v682_v2 = vpop.f32.mrf.mxu3  ;;  %843 = vmatpush.msra.mxu1 %v1675_v63 }
 0x101   : > { %v1699_v10 = vadd.f32 %v1623_v40, %v682_v2  ;;  %v892_v2 = vmul.f32 %v1763_v35, %v1763_v35 }
 0x102   : > { %844 = vmatpush.msra.mxu1 %v1681_v1 }
 0x103   : > { %v901_v45 = vmul.f32 %v1699_v10, %v1699_v10 }
 0x104   : > { %845 = vmatpush.msra.mxu1 %v1685_v3 }
 0x106   : > { %846 = vmatpush.msra.mxu1 %v1689_v4 }
 0x107   : > { %847 = vmatmul.f32.vlgmr.msra.gmra.mxu1 %v1509_v9 }
 0x108   : > { %903 = vmatpush.msrb.mxu1 %v886_v5  ;;  %v684_v7 = vpop.f32.mrf.mxu3  ;;  %v891_v5 = vmul.f32 %v1770_v32, %v1770_v32 }
 0x109   : > { %v1702_v11 = vadd.f32 %v1623_v40, %v684_v7  ;;  %v898_v40 = vmul.f32 %v1722_v18, %v1722_v18  ;;  %v889_v7 = vmul.f32 %v1779_v38, %v1779_v38 }
 0x10a   : > { %904 = vmatpush.msrb.mxu1 %v885_v6  ;;  %v890_v6 = vmul.f32 %v1774_v37, %v1774_v37 }
 0x10b   : > { %851 = vmatpush.msrb.mxu2 %v1702_v11  ;;  %v902_v41 = vmul.f32 %v1702_v11, %v1702_v11 }
 0x10c   : > { %905 = vmatpush.msrb.mxu1 %v884_v12  ;;  %v887_v12 = vmul.f32 %v1797_v49, %v1797_v49 }
 0x10d   : > { %852 = vmatpush.msrb.mxu2 %v1699_v10 }
 0x10e   : > { %906 = vmatpush.msrb.mxu1 %v883_v13 }
 0x10f   : > { %853 = vmatpush.msrb.mxu2 %v1710_v14 }
 0x110   : > { %907 = vmatpush.msrb.mxu1 %v882_v15 }
 0x111   : > { %854 = vmatpush.msrb.mxu2 %v1716_v16 }
 0x112   : > { %908 = vmatpush.msrb.mxu1 %v881_v17 }
 0x113   : > { %855 = vmatpush.msrb.mxu2 %v1722_v18 }
 0x114   : > { %909 = vmatpush.msrb.mxu1 %v880_v19 }
 0x115   : > { %856 = vmatpush.msrb.mxu2 %v1728_v21 }
 0x116   : > { %910 = vmatpush.msrb.mxu1 %v879_v22 }
 0x117   : > { %857 = vmatpush.msrb.mxu2 %v1735_v23 }
 0x118   : > { %911 = vmatpush.msrb.mxu1 %v878_v24 }
 0x119   : > { %858 = vmatpush.msrb.mxu2 %v1742_v25 }
 0x11a   : > { %912 = vmatpush.msrb.mxu1 %v877_v27 }
 0x11b   : > { %859 = vmatpush.msrb.mxu2 %v1749_v28 }
 0x11c   : > { %913 = vmatpush.msrb.mxu1 %v876_v30 }
 0x11d   : > { %860 = vmatpush.msrb.mxu2 %v1756_v31 }
 0x11e   : > { %914 = vmatpush.msrb.mxu1 %v875_v33 }
 0x11f   : > { %861 = vmatpush.msrb.mxu2 %v1763_v35 }
 0x120   : > { %915 = vmatpush.msrb.mxu1 %v874_v36 }
 0x121   : > { %862 = vmatpush.msrb.mxu2 %v1770_v32 }
 0x122   : > { %916 = vmatpush.msrb.mxu1 %v873_v29 }
 0x123   : > { %863 = vmatpush.msrb.mxu2 %v1774_v37 }
 0x124   : > { %917 = vmatpush.msrb.mxu1 %v872_v39 }
 0x125   : > { %864 = vmatpush.msrb.mxu2 %v1779_v38 }
 0x126   : > { %918 = vmatpush.msrb.mxu1 %v871_v26 }
 0x127   : > { %865 = vmatpush.msrb.mxu2 %v1790_v44  ;;  %919 = vmatmul.f32.vlgmr.msrb.gmra.mxu1 %v1509_v9 }
 0x128   : > { %923 = vmatpush.msra.mxu1 %v902_v41 }
 0x129   : > { %866 = vmatpush.msrb.mxu2 %v1797_v49 }
 0x12a   : > { %924 = vmatpush.msra.mxu1 %v901_v45  ;;  %867 = vmatmul.f32.vlgmr.msrb.gmra.mxu2 %v1509_v9 }
 0x12c   : > { %925 = vmatpush.msra.mxu1 %v900_v50 }
 0x12e   : > { %926 = vmatpush.msra.mxu1 %v899_v52 }
 0x130   : > { %927 = vmatpush.msra.mxu1 %v898_v40 }
 0x132   : > { %928 = vmatpush.msra.mxu1 %v897_v53 }
 0x134   : > { %929 = vmatpush.msra.mxu1 %v896_v54 }
 0x136   : > { %930 = vmatpush.msra.mxu1 %v895_v55 }
 0x138   : > { %931 = vmatpush.msra.mxu1 %v894_v60 }
 0x13a   : > { %932 = vmatpush.msra.mxu1 %v893_v0 }
 0x13c   : > { %933 = vmatpush.msra.mxu1 %v892_v2 }
 0x13e   : > { %934 = vmatpush.msra.mxu1 %v891_v5 }
 0x140   : > { %935 = vmatpush.msra.mxu1 %v890_v6 }
 0x142   : > { %936 = vmatpush.msra.mxu1 %v889_v7 }
 0x144   : > { %937 = vmatpush.msra.mxu1 %v888_v8 }
 0x146   : > { %938 = vmatpush.msra.mxu1 %v887_v12 }
 0x147   : > { %939 = vmatmul.f32.vlgmr.msra.gmra.mxu1 %v1509_v9 }
 0x184   : > { %v848_v13 = vpop.f32.mrf.mxu1 }
 0x1a4   : > { %v920_v15 = vpop.f32.mrf.mxu1 }
 0x1ad   : > { %v868_v17 = vpop.f32.mrf.mxu2 }
 0x1ae   : > { %v869_v19 = vadd.f32 %v868_v17, %v848_v13 }
 0x1b0   : > { %v943_v20 = vmul.f32 0.00390625, %v869_v19 }
 0x1b2   : > { %v945_v27 = vmul.f32 %v943_v20, %v943_v20  ;;  %v1832_v9 = vperm.slane %v943_v20, 0 }
 0x1b4   : > { %v949_v40 = vsub.f32 %v1689_v4, %v1832_v9  ;;  %v950_v53 = vsub.f32 %v1685_v3, %v1832_v9  ;;  %v951_v54 = vsub.f32 %v1681_v1, %v1832_v9  ;;  %v952_v55 = vsub.f32 %v1675_v63, %v1832_v9 }
 0x1b5   : > { %v953_v0 = vsub.f32 %v1671_v62, %v1832_v9  ;;  %v954_v2 = vsub.f32 %v1667_v61, %v1832_v9  ;;  %v955_v4 = vsub.f32 %v1663_v59, %v1832_v9  ;;  %v956_v3 = vsub.f32 %v1659_v58, %v1832_v9 }
 0x1b6   : > { %v957_v1 = vsub.f32 %v1655_v57, %v1832_v9  ;;  %v958_v63 = vsub.f32 %v1652_v56, %v1832_v9  ;;  %v959_v5 = vsub.f32 %v1647_v51, %v1832_v9  ;;  %v960_v62 = vsub.f32 %v1643_v48, %v1832_v9 }
 0x1b7   : > { %v961_v61 = vsub.f32 %v1639_v47, %v1832_v9  ;;  %v962_v59 = vsub.f32 %v1635_v46, %v1832_v9  ;;  %v963_v58 = vsub.f32 %v1626_v42, %v1832_v9  ;;  %v964_v57 = vsub.f32 %v1629_v43, %v1832_v9  ;;  %v1876_v47 = vld [vmem:[%s2098_s3] ss:$0 sm:$0xff] }
 0x1b8   : > { %v965_v56 = vsub.f32 %v1797_v49, %v1832_v9  ;;  %v966_v42 = vsub.f32 %v1790_v44, %v1832_v9  ;;  %v967_v43 = vsub.f32 %v1779_v38, %v1832_v9  ;;  %v968_v46 = vsub.f32 %v1774_v37, %v1832_v9 }
 0x1b9   : > { %v969_v7 = vsub.f32 %v1770_v32, %v1832_v9  ;;  %v970_v8 = vsub.f32 %v1763_v35, %v1832_v9  ;;  %v971_v12 = vsub.f32 %v1756_v31, %v1832_v9  ;;  %v972_v44 = vsub.f32 %v1749_v28, %v1832_v9 }
 0x1ba   : > { %v974_v17 = vsub.f32 %v1735_v23, %v1832_v9 }
 0x1c4   : > { %v940_v22 = vpop.f32.mrf.mxu1 }
 0x1c5   : > { %v941_v24 = vadd.f32 %v940_v22, %v920_v15  ;;  %v973_v15 = vsub.f32 %v1742_v25, %v1832_v9 }
 0x1c7   : > { %v944_v30 = vmul.f32 0.00390625, %v941_v24 }
 0x1c9   : > { %v946_v33 = vsub.f32 %v944_v30, %v945_v27  ;;  %v1906_v30 = vld [vmem:[%s2099_s4] ss:$0 sm:$0xff] }
 0x1cb   : > { %v947_v34 = vmax.f32 %v946_v33, 0.0  ;;  %v975_v33 = vsub.f32 %v1728_v21, %v1832_v9 }
 0x1cd   : > { %v981_v36 = vadd.f32 1e-05, %v947_v34  ;;  %v976_v34 = vsub.f32 %v1722_v18, %v1832_v9 }
 0x1cf   : > { %1483 = vrsqrt.f32 %v981_v36  ;;  %vm988_vm1 = vweird.f32 %v981_v36 }
 0x1d5   : > { %v1484_v29 = vpop.eup %1483 }
 0x1d6   : > { %v983_v39 = vmul.f32 %v1484_v29, %v981_v36  ;;  %vm989_vm0 = vweird.f32 %v1484_v29 }
 0x1d7   : > { %vm990_vm2 = vmor %vm988_vm1, %vm989_vm0 }
 0x1d8   : > { %v984_v26 = vmul.f32 %v1484_v29, %v983_v39  ;;  %v977_v39 = vsub.f32 %v1716_v16, %v1832_v9 }
 0x1da   : > { %v985_v41 = vmul.f32 0.5, %v984_v26  ;;  %v978_v26 = vsub.f32 %v1710_v14, %v1832_v9 }
 0x1dc   : > { %v986_v45 = vsub.f32 1.5, %v985_v41 }
 0x1de   : > { %v987_v50 = vmul.f32 %v1484_v29, %v986_v45 }
 0x1e0   : > { %v991_v52 = vsel %vm990_vm2, %v1484_v29, %v987_v50  ;;  %v979_v50 = vsub.f32 %v1699_v10, %v1832_v9 }
 0x1e1   : > { %v1842_v60 = vperm.slane %v991_v52, 0 }
 0x1e3   : > { %v993_v51 = vmul.f32 %v1842_v60, %v949_v40  ;;  %v994_v6 = vmul.f32 %v1842_v60, %v950_v53  ;;  %v995_v48 = vmul.f32 %v1842_v60, %v951_v54  ;;  %v996_v49 = vmul.f32 %v1842_v60, %v952_v55 }
 0x1e4   : > { %v997_v13 = vmul.f32 %v1842_v60, %v953_v0  ;;  %v998_v19 = vmul.f32 %v1842_v60, %v954_v2  ;;  %v999_v20 = vmul.f32 %v1842_v60, %v955_v4  ;;  %v1000_v36 = vmul.f32 %v1842_v60, %v956_v3 }
 0x1e5   : > { %v1029_v22 = vmul.f32 %v1876_v47, %v993_v51  ;;  %v1030_v24 = vmul.f32 %v1876_v47, %v994_v6  ;;  %v1031_v27 = vmul.f32 %v1876_v47, %v995_v48  ;;  %v1032_v29 = vmul.f32 %v1876_v47, %v996_v49 }
 0x1e6   : > { %v1001_v41 = vmul.f32 %v1842_v60, %v957_v1  ;;  %v1033_v45 = vmul.f32 %v1876_v47, %v997_v13  ;;  %v1002_v52 = vmul.f32 %v1842_v60, %v958_v63  ;;  %v1003_v40 = vmul.f32 %v1842_v60, %v959_v5 }
 0x1e7   : > { %v1034_v53 = vmul.f32 %v1876_v47, %v998_v19  ;;  %v1035_v54 = vmul.f32 %v1876_v47, %v999_v20  ;;  %v1065_v55 = vadd.f32 %v1906_v30, %v1029_v22  ;;  %v1066_v0 = vadd.f32 %v1906_v30, %v1030_v24 }
 0x1e8   : > { %v1067_v2 = vadd.f32 %v1906_v30, %v1031_v27  ;;  %v980_v4 = vsub.f32 %v1702_v11, %v1832_v9  ;;  %v1004_v3 = vmul.f32 %v1842_v60, %v960_v62  ;;  %v1036_v1 = vmul.f32 %v1876_v47, %v1000_v36 }
 0x1e9   : > { %v1068_v63 = vadd.f32 %v1906_v30, %v1032_v29  ;;  %v1005_v5 = vmul.f32 %v1842_v60, %v961_v61  ;;  %v1006_v51 = vmul.f32 %v1842_v60, %v962_v59  ;;  %v1037_v6 = vmul.f32 %v1876_v47, %v1001_v41 }
 0x1ea   : > { %v1069_v48 = vadd.f32 %v1906_v30, %v1033_v45  ;;  %v1007_v49 = vmul.f32 %v1842_v60, %v963_v58  ;;  %v1038_v62 = vmul.f32 %v1876_v47, %v1002_v52  ;;  %v1039_v13 = vmul.f32 %v1876_v47, %v1003_v40 }
 0x1eb   : > { %v1070_v61 = vadd.f32 %v1906_v30, %v1034_v53  ;;  %v1071_v59 = vadd.f32 %v1906_v30, %v1035_v54  ;;  %v1097_v19 = vmax.f32 %v1065_v55, 0.0  ;;  %v1098_v20 = vmax.f32 %v1066_v0, 0.0 }
 0x1ec   : > { %v1099_v22 = vmax.f32 %v1067_v2, 0.0  ;;  %v1008_v24 = vmul.f32 %v1842_v60, %v964_v57  ;;  %v1040_v27 = vmul.f32 %v1876_v47, %v1004_v3  ;;  %v1072_v36 = vadd.f32 %v1906_v30, %v1036_v1 }
 0x1ed   : > { %v1100_v58 = vmax.f32 %v1068_v63, 0.0  ;;  %v1009_v29 = vmul.f32 %v1842_v60, %v965_v56  ;;  %v1041_v41 = vmul.f32 %v1876_v47, %v1005_v5  ;;  %v1073_v45 = vadd.f32 %v1906_v30, %v1037_v6  ;;  %1129 = vst [vmem:[%s1942_s29] sm:$0xff] %v1097_v19 }
 0x1ee   : > { %v1101_v52 = vmax.f32 %v1069_v48, 0.0  ;;  %v1010_v40 = vmul.f32 %v1842_v60, %v966_v42  ;;  %v1042_v53 = vmul.f32 %v1876_v47, %v1006_v51  ;;  %v1074_v57 = vadd.f32 %v1906_v30, %v1038_v62  ;;  %1130 = vst [vmem:[%s1942_s29 + $0x8] sm:$0xff] %v1098_v20 }
 0x1ef   : > { %v1102_v54 = vmax.f32 %v1070_v61, 0.0  ;;  %v1011_v56 = vmul.f32 %v1842_v60, %v967_v43  ;;  %v1043_v55 = vmul.f32 %v1876_v47, %v1007_v49  ;;  %v1075_v0 = vadd.f32 %v1906_v30, %v1039_v13  ;;  %1131 = vst [vmem:[%s1942_s29 + $0x10] sm:$0xff] %v1099_v22 }
 0x1f0   : > { %v1103_v2 = vmax.f32 %v1071_v59, 0.0  ;;  %v1012_v42 = vmul.f32 %v1842_v60, %v968_v46  ;;  %v1044_v3 = vmul.f32 %v1876_v47, %v1008_v24  ;;  %v1076_v1 = vadd.f32 %v1906_v30, %v1040_v27  ;;  %1132 = vst [vmem:[%s1942_s29 + $0x18] sm:$0xff] %v1100_v58 }
 0x1f1   : > { %v1104_v63 = vmax.f32 %v1072_v36, 0.0  ;;  %v1013_v38 = vmul.f32 %v1842_v60, %v969_v7  ;;  %v1045_v43 = vmul.f32 %v1876_v47, %v1009_v29  ;;  %v1077_v5 = vadd.f32 %v1906_v30, %v1041_v41  ;;  %1133 = vst [vmem:[%s1942_s29 + $0x20] sm:$0xff] %v1101_v52 }
 0x1f2   : > { %v1105_v51 = vmax.f32 %v1073_v45, 0.0  ;;  %v1014_v37 = vmul.f32 %v1842_v60, %v970_v8  ;;  %v1046_v46 = vmul.f32 %v1876_v47, %v1010_v40  ;;  %v1078_v6 = vadd.f32 %v1906_v30, %v1042_v53  ;;  %1134 = vst [vmem:[%s1942_s29 + $0x28] sm:$0xff] %v1102_v54 }
 0x1f3   : > { %v1106_v48 = vmax.f32 %v1074_v57, 0.0  ;;  %v1015_v32 = vmul.f32 %v1842_v60, %v971_v12  ;;  %v1047_v7 = vmul.f32 %v1876_v47, %v1011_v56  ;;  %v1079_v49 = vadd.f32 %v1906_v30, %v1043_v55  ;;  %1135 = vst [vmem:[%s1942_s29 + $0x30] sm:$0xff] %v1103_v2 }
 0x1f4   : > { %v1107_v62 = vmax.f32 %v1075_v0, 0.0  ;;  %v1016_v35 = vmul.f32 %v1842_v60, %v972_v44  ;;  %v1048_v8 = vmul.f32 %v1876_v47, %v1012_v42  ;;  %v1080_v13 = vadd.f32 %v1906_v30, %v1044_v3  ;;  %1136 = vst [vmem:[%s1942_s29 + $0x38] sm:$0xff] %v1104_v63 }
 0x1f5   : > { %v1108_v61 = vmax.f32 %v1076_v1, 0.0  ;;  %v1017_v31 = vmul.f32 %v1842_v60, %v973_v15  ;;  %v1049_v12 = vmul.f32 %v1876_v47, %v1013_v38  ;;  %v1081_v59 = vadd.f32 %v1906_v30, %v1045_v43  ;;  %1137 = vst [vmem:[%s1942_s29 + $0x40] sm:$0xff] %v1105_v51 }
 0x1f6   : > { %v1109_v19 = vmax.f32 %v1077_v5, 0.0  ;;  %v1018_v28 = vmul.f32 %v1842_v60, %v974_v17  ;;  %v1050_v44 = vmul.f32 %v1876_v47, %v1014_v37  ;;  %v1082_v20 = vadd.f32 %v1906_v30, %v1046_v46  ;;  %1138 = vst [vmem:[%s1942_s29 + $0x48] sm:$0xff] %v1106_v48 }
 0x1f7   : > { %v1110_v22 = vmax.f32 %v1078_v6, 0.0  ;;  %v1019_v25 = vmul.f32 %v1842_v60, %v975_v33  ;;  %v1051_v15 = vmul.f32 %v1876_v47, %v1015_v32  ;;  %v1083_v24 = vadd.f32 %v1906_v30, %v1047_v7  ;;  %1139 = vst [vmem:[%s1942_s29 + $0x50] sm:$0xff] %v1107_v62 }
 0x1f8   : > { %v1111_v27 = vmax.f32 %v1079_v49, 0.0  ;;  %v1020_v23 = vmul.f32 %v1842_v60, %v976_v34  ;;  %v1052_v17 = vmul.f32 %v1876_v47, %v1016_v35  ;;  %v1084_v36 = vadd.f32 %v1906_v30, %v1048_v8  ;;  %1140 = vst [vmem:[%s1942_s29 + $0x58] sm:$0xff] %v1108_v61 }
 0x1f9   : > { %v1112_v58 = vmax.f32 %v1080_v13, 0.0  ;;  %v1021_v21 = vmul.f32 %v1842_v60, %v977_v39  ;;  %v1053_v33 = vmul.f32 %v1876_v47, %v1017_v31  ;;  %v1085_v29 = vadd.f32 %v1906_v30, %v1049_v12  ;;  %1141 = vst [vmem:[%s1942_s29 + $0x60] sm:$0xff] %v1109_v19 }
 0x1fa   : > { %v1113_v41 = vmax.f32 %v1081_v59, 0.0  ;;  %v1022_v18 = vmul.f32 %v1842_v60, %v978_v26  ;;  %v1054_v34 = vmul.f32 %v1876_v47, %v1018_v28  ;;  %v1086_v45 = vadd.f32 %v1906_v30, %v1050_v44  ;;  %1142 = vst [vmem:[%s1942_s29 + $0x68] sm:$0xff] %v1110_v22 }
 0x1fb   : > { %v1114_v16 = vmax.f32 %v1082_v20, 0.0  ;;  %v1023_v39 = vmul.f32 %v1842_v60, %v979_v50  ;;  %v1055_v52 = vmul.f32 %v1876_v47, %v1019_v25  ;;  %v1087_v40 = vadd.f32 %v1906_v30, %v1051_v15  ;;  %1143 = vst [vmem:[%s1942_s29 + $0x70] sm:$0xff] %v1111_v27 }
 0x1fc   : > { %v1115_v14 = vmax.f32 %v1083_v24, 0.0  ;;  %v1024_v26 = vmul.f32 %v1842_v60, %v980_v4  ;;  %v1056_v53 = vmul.f32 %v1876_v47, %v1020_v23  ;;  %v1088_v57 = vadd.f32 %v1906_v30, %v1052_v17  ;;  %1144 = vst [vmem:[%s1942_s29 + $0x78] sm:$0xff] %v1112_v58 }
 0x1fd   : > { %v1116_v10 = vmax.f32 %v1084_v36, 0.0  ;;  %v1057_v50 = vmul.f32 %v1876_v47, %v1021_v21  ;;  %v1089_v54 = vadd.f32 %v1906_v30, %v1053_v33  ;;  %v1117_v56 = vmax.f32 %v1085_v29, 0.0  ;;  %1145 = vst [vmem:[%s1942_s29 + $0x80] sm:$0xff] %v1113_v41 }
 0x1fe   : > { %v1058_v55 = vmul.f32 %v1876_v47, %v1022_v18  ;;  %v1090_v11 = vadd.f32 %v1906_v30, %v1054_v34  ;;  %v1118_v9 = vmax.f32 %v1086_v45, 0.0  ;;  %1146 = vst [vmem:[%s1942_s29 + $0x88] sm:$0xff] %v1114_v16  ;;  %v1059_v60 = vmul.f32 %v1876_v47, %v1023_v39 }
 0x1ff   : > { %v1091_v4 = vadd.f32 %v1906_v30, %v1055_v52  ;;  %v1119_v0 = vmax.f32 %v1087_v40, 0.0  ;;  %1147 = vst [vmem:[%s1942_s29 + $0x90] sm:$0xff] %v1115_v14  ;;  %v1060_v2 = vmul.f32 %v1876_v47, %v1024_v26  ;;  %v1092_v42 = vadd.f32 %v1906_v30, %v1056_v53 }
 0x200   : > { %v1120_v3 = vmax.f32 %v1088_v57, 0.0  ;;  %1148 = vst [vmem:[%s1942_s29 + $0x98] sm:$0xff] %v1116_v10  ;;  %v1093_v1 = vadd.f32 %v1906_v30, %v1057_v50  ;;  %v1121_v63 = vmax.f32 %v1089_v54, 0.0  ;;  %v1094_v38 = vadd.f32 %v1906_v30, %v1058_v55 }
 0x201   : > { %1149 = vst [vmem:[%s1942_s29 + $0xa0] sm:$0xff] %v1117_v56  ;;  %v1122_v43 = vmax.f32 %v1090_v11, 0.0  ;;  %v1095_v47 = vadd.f32 %v1906_v30, %v1059_v60  ;;  %v1123_v5 = vmax.f32 %v1091_v4, 0.0  ;;  %v1096_v51 = vadd.f32 %v1906_v30, %v1060_v2 }
 0x202   : > { %1150 = vst [vmem:[%s1942_s29 + $0xa8] sm:$0xff] %v1118_v9  ;;  %v1124_v37 = vmax.f32 %v1092_v42, 0.0  ;;  %v1125_v46 = vmax.f32 %v1093_v1, 0.0  ;;  %v1126_v6 = vmax.f32 %v1094_v38, 0.0 }
 0x203   : > { %1151 = vst [vmem:[%s1942_s29 + $0xb0] sm:$0xff] %v1119_v0  ;;  %v1127_v48 = vmax.f32 %v1095_v47, 0.0  ;;  %v1128_v32 = vmax.f32 %v1096_v51, 0.0 }
 0x204   : > { %1152 = vst [vmem:[%s1942_s29 + $0xb8] sm:$0xff] %v1120_v3 }
 0x205   : > { %1153 = vst [vmem:[%s1942_s29 + $0xc0] sm:$0xff] %v1121_v63 }
 0x206   : > { %1154 = vst [vmem:[%s1942_s29 + $0xc8] sm:$0xff] %v1122_v43 }
 0x207   : > { %1155 = vst [vmem:[%s1942_s29 + $0xd0] sm:$0xff] %v1123_v5 }
 0x208   : > { %1156 = vst [vmem:[%s1942_s29 + $0xd8] sm:$0xff] %v1124_v37 }
 0x209   : > { %1157 = vst [vmem:[%s1942_s29 + $0xe0] sm:$0xff] %v1125_v46 }
 0x20a   : > { %1158 = vst [vmem:[%s1942_s29 + $0xe8] sm:$0xff] %v1126_v6 }
 0x20b   : > { %1159 = vst [vmem:[%s1942_s29 + $0xf0] sm:$0xff] %v1127_v48 }
 0x20c   : > { %1160 = vst [vmem:[%s1942_s29 + $0xf8] sm:$0xff] %v1128_v32 }
 0x20d PF: > { %s15_s20 = sadd.s32 1, %s1507_s20   ;;  %s2101_s18 = smov %s1503_s19 }
 0x20e   : > { %p12_p5 = scmp.ge.s32.totalorder %s15_s20, 4   ;;  %s2102_s19 = smov %s2104_s21 }
 0x210   :  { %14 = sbr.rel (!%p12_p5) target bundleno = 2 (0x2), region = 90 }

</bundles_post_ra>
